<compile_context>
chip_gen: v7x
topology: tpu7x:2x2x1
jax: 0.10.0
libtpu: 0.0.40
codegen_flags: <defaults>
</compile_context>

<pallas_src>
import functools

import jax
import jax.numpy as jnp
from jax.experimental import pallas as pl
from jax.experimental.pallas import tpu as pltpu


# ---------------------------------------------------------------------------
# helpers
# ---------------------------------------------------------------------------
def _round_up(x, m):
    return ((x + m - 1) // m) * m


def _pad2(a, rows, cols):
    r, c = a.shape
    return jnp.pad(a, ((0, rows - r), (0, cols - c)))


def _softplus_b05_t14(v):
    """PyTorch Softplus(beta=0.5, threshold=14): 2*log1p(exp(0.5*v)), linear if 0.5*v > 14."""
    bv = 0.5 * v
    # Clamp before exp: jnp.where evaluates both branches; avoid inf in the dead branch.
    return jnp.where(bv > 14.0, v, 2.0 * jnp.log1p(jnp.exp(jnp.minimum(bv, 14.0))))


def _vmem_budget_bytes():
    """Generation-aware VMEM cap with headroom (v7x: 64 MiB/TC; v5e/v6e: 128 MiB)."""
    try:
        cap = pltpu.get_tpu_info().vmem_capacity_bytes
    except Exception:
        cap = 64 * 1024 * 1024
    return min(int(cap * 0.85), 110 * 1024 * 1024)


# ---------------------------------------------------------------------------
# kernels
# ---------------------------------------------------------------------------
def node_linear_kernel(node_ref, wt_ref, out_ref):
    """new_node = node @ Wn1^T (node_layer1, no bias), tiled over N.

    Emits directly in the MXU dtype so the edge pass never re-casts the
    resident array.
    """
    out_ref[...] = jnp.dot(node_ref[...], wt_ref[...],
                           preferred_element_type=jnp.float32).astype(out_ref.dtype)


def edge_message_kernel(src_ref, rbf_ref, x_ref, w1t_ref, b1_ref, w2t_ref, b2_ref,
                        msg_ref, *, mxu_dtype):
    """Edge pass, grid=(num_e,): msg = new_node[src] * Lin2(sp(Lin1(rbf)))."""
    # --- per-edge filter MLP: Lin1 -> softplus(0.5, 14) -> Lin2 --------------
    h = jnp.dot(rbf_ref[...], w1t_ref[...],
                preferred_element_type=jnp.float32) + b1_ref[...]          # (E_t, D)
    h = _softplus_b05_t14(h)                                               # f32 elementwise
    h = jnp.dot(h.astype(mxu_dtype), w2t_ref[...],
                preferred_element_type=jnp.float32) + b2_ref[...]          # (E_t, D)

    # --- gather new_node[src] via exact 0/1 one-hot matmul (MXU) --------------
    e_t = rbf_ref.shape[0]
    n_all = x_ref.shape[0]
    col = jax.lax.broadcasted_iota(jnp.int32, (e_t, n_all), 1)             # (E_t, N)
    src_oh = (col == src_ref[...]).astype(mxu_dtype)                       # single cast
    x_src = jnp.dot(src_oh, x_ref[...],
                    preferred_element_type=jnp.float32)                    # (E_t, D)

    msg_ref[...] = (x_src * h).astype(msg_ref.dtype)                       # (E_t, D)


def scatter_finalize_kernel(dst_ref, msg_ref, node_ref,
                            wn2t_ref, bn2_ref, wn3t_ref, bn3_ref,
                            out_ref, acc_ref, *, mxu_dtype):
    """Grid = (n_tiles [parallel], e_tiles [arbitrary, innermost]).

    Only the cheap scatter matmul sits inside the (n, e) grid; the finalize
    (node_layer2/3 + residual) is fused into the last E step.
    """
    e = pl.program_id(1)

    @pl.when(e == 0)
    def _():
        acc_ref[...] = jnp.zeros_like(acc_ref)

    # Scatter one-hot built pre-transposed (N_t, E_t): E on the lane axis, no
    # MXU transpose path; constructed right before its use (short live range).
    n_t = acc_ref.shape[0]
    e_t = msg_ref.shape[0]
    n_start = pl.program_id(0) * n_t
    rows = jax.lax.broadcasted_iota(jnp.int32, (n_t, e_t), 0) + n_start    # (N_t, E_t)
    dst_ohT = (rows == dst_ref[...]).astype(mxu_dtype)                     # single cast
    acc_ref[...] += jnp.dot(dst_ohT, msg_ref[...],
                            preferred_element_type=jnp.float32)            # (N_t, D)

    # --- finalize: node_layer2 -> softplus -> node_layer3 -> residual --------
    # These matmuls run once per node tile (negligible compute), kept in f32
    # for accuracy.
    @pl.when(e == pl.num_programs(1) - 1)
    def _():
        cf = acc_ref[...]
        c1 = _softplus_b05_t14(
            jnp.dot(cf, wn2t_ref[...], preferred_element_type=jnp.float32)
            + bn2_ref[...])
        c2 = jnp.dot(c1, wn3t_ref[...],
                     preferred_element_type=jnp.float32) + bn3_ref[...]
        out_ref[...] = node_ref[...] + c2


# ---------------------------------------------------------------------------
# wrapper
# ---------------------------------------------------------------------------
def interaction_forward(node, src, dst, rbf,
                        wn1, w1, b1, w2, b2, wn2, bn2, wn3, bn3,
                        *, n_tile=256, e_tile=512, mxu_dtype=jnp.bfloat16):
    """node:(N,D) f32; src/dst:(E,) int32; rbf:(E,R) f32; weights in PyTorch (out,in) layout.

    mxu_dtype=jnp.bfloat16 (default, fast MXU path) or jnp.float32 (exact path).
    """
    assert e_tile % 128 == 0, "edge tile must be a multiple of 128 (lane width)"
    assert n_tile % 8 == 0, "node tile must be a multiple of 8 (sublanes)"

    node = jnp.asarray(node, jnp.float32)
    rbf = jnp.asarray(rbf, jnp.float32)
    N, D = node.shape
    E, R = rbf.shape

    D_pad = _round_up(D, 128)
    R_pad = _round_up(R, 128)
    N_pad = _round_up(N, n_tile)
    E_pad = _round_up(E, e_tile)
    num_n = N_pad // n_tile
    num_e = E_pad // e_tile

    # Lane-dense, zero-padded operands (zeros never contaminate the real lanes).
    node_p = _pad2(node, N_pad, D_pad)                              # f32 (residual)
    node_mxu = node_p.astype(mxu_dtype)                             # MXU input for kernel 1
    rbf_p = _pad2(rbf, E_pad, R_pad).astype(mxu_dtype)

    # src in column layout (E,1) for the (E_t, N) gather one-hot; dst in row
    # layout (1,E) so the (N_t, E_t) scatter one-hot needs no in-kernel transpose.
    # Padded edges: dst = -1 -> matches no row -> contribution dropped (their
    # msg rows are garbage by design, never scattered).
    src_p = jnp.pad(jnp.asarray(src, jnp.int32), (0, E_pad - E)).reshape(E_pad, 1)
    dst_p = jnp.pad(jnp.asarray(dst, jnp.int32), (0, E_pad - E),
                    constant_values=-1).reshape(1, E_pad)

    def t_pad(w, rows, cols, dt):   # transpose PyTorch (out,in) weight and pad
        return _pad2(jnp.asarray(w, jnp.float32).T, rows, cols).astype(dt)

    def b_pad(b):
        return _pad2(jnp.asarray(b, jnp.float32).reshape(1, -1), 1, D_pad)

    # Edge-side (hot) weights in mxu_dtype; finalize weights stay f32.
    wn1t = t_pad(wn1, D_pad, D_pad, mxu_dtype)
    w1t = t_pad(w1, R_pad, D_pad, mxu_dtype)
    w2t = t_pad(w2, D_pad, D_pad, mxu_dtype)
    wn2t = t_pad(wn2, D_pad, D_pad, jnp.float32)
    wn3t = t_pad(wn3, D_pad, D_pad, jnp.float32)
    b1r, b2r, bn2r, bn3r = b_pad(b1), b_pad(b2), b_pad(bn2), b_pad(bn3)

    vmem_cap = _vmem_budget_bytes()

    # --- kernel 1: node_layer1 (no bias), tiled over N ------------------------
    new_node = pl.pallas_call(
        node_linear_kernel,
        out_shape=jax.ShapeDtypeStruct((N_pad, D_pad), mxu_dtype),
        grid_spec=pltpu.PrefetchScalarGridSpec(
            num_scalar_prefetch=0, grid=(num_n,),
            in_specs=[pl.BlockSpec((n_tile, D_pad), lambda n: (n, 0)),
                      pl.BlockSpec((D_pad, D_pad), lambda n: (0, 0))],
            out_specs=pl.BlockSpec((n_tile, D_pad), lambda n: (n, 0))),
        compiler_params=pltpu.CompilerParams(
            dimension_semantics=("parallel",),
            vmem_limit_bytes=vmem_cap),
    )(node_mxu, wn1t)

    # --- kernel 2: edge pass (filter MLP + gather + msg), grid over E only ----
    edge_kernel = functools.partial(edge_message_kernel, mxu_dtype=mxu_dtype)
    msg = pl.pallas_call(
        edge_kernel,
        out_shape=jax.ShapeDtypeStruct((E_pad, D_pad), mxu_dtype),
        grid_spec=pltpu.PrefetchScalarGridSpec(
            num_scalar_prefetch=0, grid=(num_e,),
            in_specs=[
                pl.BlockSpec((e_tile, 1), lambda e: (e, 0)),          # src (col)
                pl.BlockSpec((e_tile, R_pad), lambda e: (e, 0)),      # rbf tile
                pl.BlockSpec((N_pad, D_pad), lambda e: (0, 0)),       # new_node (resident)
                pl.BlockSpec((R_pad, D_pad), lambda e: (0, 0)),       # w1t
                pl.BlockSpec((1, D_pad), lambda e: (0, 0)),           # b1
                pl.BlockSpec((D_pad, D_pad), lambda e: (0, 0)),       # w2t
                pl.BlockSpec((1, D_pad), lambda e: (0, 0)),           # b2
            ],
            out_specs=pl.BlockSpec((e_tile, D_pad), lambda e: (e, 0))),
        compiler_params=pltpu.CompilerParams(
            dimension_semantics=("parallel",),
            vmem_limit_bytes=vmem_cap),
    )(src_p, rbf_p, new_node, w1t, b1r, w2t, b2r)

    # --- kernel 3: scatter-sum + node_layer2/3 + residual ----------------------
    scat_kernel = functools.partial(scatter_finalize_kernel, mxu_dtype=mxu_dtype)
    out_p = pl.pallas_call(
        scat_kernel,
        out_shape=jax.ShapeDtypeStruct((N_pad, D_pad), jnp.float32),
        grid_spec=pltpu.PrefetchScalarGridSpec(
            num_scalar_prefetch=0,
            grid=(num_n, num_e),                       # N parallel, E innermost reduction
            in_specs=[
                pl.BlockSpec((1, e_tile), lambda n, e: (0, e)),        # dst (row)
                pl.BlockSpec((e_tile, D_pad), lambda n, e: (e, 0)),    # msg tile
                pl.BlockSpec((n_tile, D_pad), lambda n, e: (n, 0)),    # node tile (residual)
                pl.BlockSpec((D_pad, D_pad), lambda n, e: (0, 0)),     # wn2t
                pl.BlockSpec((1, D_pad), lambda n, e: (0, 0)),         # bn2
                pl.BlockSpec((D_pad, D_pad), lambda n, e: (0, 0)),     # wn3t
                pl.BlockSpec((1, D_pad), lambda n, e: (0, 0)),         # bn3
            ],
            out_specs=pl.BlockSpec((n_tile, D_pad), lambda n, e: (n, 0)),
            scratch_shapes=[pltpu.VMEM((n_tile, D_pad), jnp.float32)]),
        compiler_params=pltpu.CompilerParams(
            dimension_semantics=("parallel", "arbitrary"),
            vmem_limit_bytes=vmem_cap),
    )(dst_p, msg, node_p, wn2t, bn2r, wn3t, bn3r)

    return out_p[:N, :D]


# ---------------------------------------------------------------------------
# pure-JAX reference (mirrors the PyTorch/DGL semantics)
# ---------------------------------------------------------------------------
def interaction_reference(node, src, dst, rbf,
                          wn1, w1, b1, w2, b2, wn2, bn2, wn3, bn3):
    new_node = node @ wn1.T
    h = rbf @ w1.T + b1
    h = _softplus_b05_t14(h)
    h = h @ w2.T + b2
    msg = new_node[src] * h
    cf = jax.ops.segment_sum(msg, dst, num_segments=node.shape[0])
    c1 = _softplus_b05_t14(cf @ wn2.T + bn2)
    c2 = c1 @ wn3.T + bn3
    return node + c2


# ---------------------------------------------------------------------------
if __name__ == "__main__":
    key = jax.random.PRNGKey(0)
    N, E, RBF_DIM, DIM = 24, 200, 32, 64       # small graph, multiple E/N tiles

    ks = jax.random.split(key, 13)
    src = jax.random.randint(ks[0], (E,), 0, N, dtype=jnp.int32)
    dst = jax.random.randint(ks[1], (E,), 0, N, dtype=jnp.int32)
    rbf = jax.random.normal(ks[2], (E, RBF_DIM), dtype=jnp.float32)
    node = jax.random.normal(ks[3], (N, DIM), dtype=jnp.float32)

    # nn.Linear default-style init (deterministic here).
    lim_r = 1.0 / jnp.sqrt(jnp.float32(RBF_DIM))
    lim_d = 1.0 / jnp.sqrt(jnp.float32(DIM))
    u = lambda k, shape, lim: jax.random.uniform(k, shape, jnp.float32, -lim, lim)
    wn1 = u(ks[4], (DIM, DIM), lim_d)                                   # node_layer1 (no bias)
    w1, b1 = u(ks[5], (DIM, RBF_DIM), lim_r), u(ks[6], (DIM,), lim_r)   # cfconv linear1
    w2, b2 = u(ks[7], (DIM, DIM), lim_d), u(ks[8], (DIM,), lim_d)       # cfconv linear2
    wn2, bn2 = u(ks[9], (DIM, DIM), lim_d), u(ks[10], (DIM,), lim_d)    # node_layer2
    wn3, bn3 = u(ks[11], (DIM, DIM), lim_d), u(ks[12], (DIM,), lim_d)   # node_layer3

    args = (node, src, dst, rbf, wn1, w1, b1, w2, b2, wn2, bn2, wn3, bn3)

    ref = interaction_reference(*args)

    # Exact path (f32 on the MXU): tight match vs reference.  Small tiles so the
    # demo exercises multi-tile grids on all three kernels.
    out = interaction_forward(*args, n_tile=16, e_tile=128,
                              mxu_dtype=jnp.float32)
    out = jax.block_until_ready(out)
    assert out.shape == (N, DIM)
    assert jnp.allclose(out, ref, rtol=1e-4, atol=1e-4), "f32 path mismatch vs reference"

    # bf16 MXU fast path (default): accuracy/perf knob, loose tolerance.
    out_bf16 = interaction_forward(*args, n_tile=16, e_tile=128,
                                   mxu_dtype=jnp.bfloat16)
    out_bf16 = jax.block_until_ready(out_bf16)
    assert jnp.allclose(out_bf16, ref, rtol=1e-1, atol=1e-1), "bf16 path mismatch vs reference"

    print("KERNEL_OK")
</pallas_src>

<mosaic_0001>
module attributes {stable_mosaic.version = 11 : i64} {
  func.func @node_linear_kernel(%arg0: i32, %arg1: memref<16x128xf32, #tpu.memory_space<vmem>>, %arg2: memref<128x128xf32, #tpu.memory_space<vmem>>, %arg3: memref<16x128xf32, #tpu.memory_space<vmem>>) attributes {dimension_semantics = [#tpu.dimension_semantics<parallel>], iteration_bounds = array<i64: 2>, scalar_prefetch = 0 : i64, scratch_operands = 0 : i64, tpu.core_type = #tpu.core_type<tc>, window_params = [{transform_indices = @transform_0, window_bounds = array<i64: 16, 128>}, {pipeline_mode = #tpu.pipeline_mode<synchronous>, transform_indices = @transform_1, window_bounds = array<i64: 128, 128>}, {transform_indices = @transform_2, window_bounds = array<i64: 16, 128>}]} {
    %c0 = arith.constant 0 : index
    %c0_0 = arith.constant 0 : index
    %0 = vector.load %arg1[%c0, %c0_0] : memref<16x128xf32, #tpu.memory_space<vmem>>, vector<16x128xf32>
    %c0_1 = arith.constant 0 : index
    %c0_2 = arith.constant 0 : index
    %1 = vector.load %arg2[%c0_1, %c0_2] : memref<128x128xf32, #tpu.memory_space<vmem>>, vector<128x128xf32>
    %cst = arith.constant dense<0.000000e+00> : vector<16x128xf32>
    %2 = tpu.matmul %0, %1, %cst {dimension_numbers = #tpu.dot_dimension_numbers<[1], [0], [0], [1], [0, 0, 1, 1], [], []>} : vector<16x128xf32>, vector<128x128xf32>, vector<16x128xf32> -> vector<16x128xf32>
    %c0_3 = arith.constant 0 : index
    %c0_4 = arith.constant 0 : index
    %3 = vector.load %arg3[%c0_3, %c0_4] : memref<16x128xf32, #tpu.memory_space<vmem>>, vector<16x128xf32>
    tpu.vector_store %arg3[%c0_3, %c0_4], %2 {strides = array<i32>} : memref<16x128xf32, #tpu.memory_space<vmem>>, vector<16x128xf32>,
    return
  }
  func.func @transform_0(%arg0: i32) -> (i32, i32) {
    %c0_i32 = arith.constant 0 : i32
    %c0_i32_0 = arith.constant 0 : i32
    return %arg0, %c0_i32 : i32, i32
  }
  func.func @transform_1(%arg0: i32) -> (i32, i32) {
    %c0_i32 = arith.constant 0 : i32
    %c0_i32_0 = arith.constant 0 : i32
    %c0_i32_1 = arith.constant 0 : i32
    return %c0_i32, %c0_i32_0 : i32, i32
  }
  func.func @transform_2(%arg0: i32) -> (i32, i32) {
    %c0_i32 = arith.constant 0 : i32
    %c0_i32_0 = arith.constant 0 : i32
    return %arg0, %c0_i32 : i32, i32
  }
}

</mosaic_0001>

<bundles_post_ra>
// kernel: tpu_custom_call.1
= control target key start
LH: loop header
LB: loop body
LE: loop exit
PB: predicated region body
PF: predicated region fallthrough
CT: control target
= control target key end

     0   :  { %7 = vsyncpa [#allocation3], 0  ;;  %s902_s0 = inlined_call_operand.hbm [shape: f32[32,128], index: 0, kind: input, shape index: {}]   ;;  %s903_s1 = inlined_call_operand.hbm [shape: f32[128,128], index: 1, kind: input, shape index: {}]   ;;  %s904_s2 = inlined_call_operand.hbm [shape: f32[32,128], index: 2, kind: output, shape index: {}]  }
   0x1   :  { %9 = vsyncpa [#allocation3 + $0x1], 0 }
   0x2   :  { %10 = vsyncpa [#allocation6], 0 }
   0x3   :  { %11 = vsyncpa [#allocation4], 0 }
   0x4   :  { %13 = vsyncpa [#allocation4 + $0x1], 0  ;;  %s687_s9 = smov 0   ;;  %s689_s10 = smov 0  }
   0x5   :  { %s691_s11 = smov 0   ;;  %s693_s12 = smov 0  }
   0x6 LB: > { %s708_s13 = sadd.s32 4294967295, %s663_s12   ;;  %s371_s14 = sadd.s32 4294967294, %s663_s12   ;;  %s663_s12 = sphi %s693_s12, %s924_s12   ;;  %s659_s11 = sphi %s691_s11, %s923_s11   ;;  %s655_s10 = sphi %s689_s10, %s922_s10   ;;  %s651_s9 = sphi %s687_s9, %s921_s9  }
   0x7   : > { %p39_p0 = scmp.ne.s32.totalorder %s655_s10, %s651_s9  ;;  %p905_p1 = scmp.eq.s32.totalorder %s708_s13, 0 }
   0x8   : > { %p90_p3 = scmp.eq.s32.totalorder %s371_s14, 1  ;;  %p372_p5 = scmp.ge.s32.totalorder %s663_s12, 1 }
   0x9   : > { %p717_p4 = por %p905_p1, %p39_p0  ;;  %p97_p7 = scmp.lt.s32.totalorder %s663_s12, 3 }
   0xa   : > { %p722_p6 = por %p90_p3, %p39_p0  ;;  %s665_s18 = smov [#allocation5]  }
   0xb   : > { %s908_s15 = scalar_select %p717_p4, 1, 0 }
   0xc   : > { %s909_s16 = scalar_select %p722_p6, 1, 0 }
   0xd   : > { %p727_p8 = pnand %p372_p5, %p97_p7  ;;  %s109_s19 = sshll.u32 %s665_s18, 4  ;;  %s731_s19 = int_to_ptr.vmem [resolvable:$true] %s109_s19 }
   0xe   : > { %s743_s21 = sadd.s32 1, %s663_s12   ;;  %s26_s22 = sadd.s32 1, %s659_s11 }
   0xf   : > { %s910_s17 = scalar_select %p727_p8, 1, 0 }
  0x10   : > { %p482_p9 = pneg %p727_p8  ;;  %s23_s23 = ssub.s32 %s663_s12, %s743_s21 }
  0x11   : > { %s535_s26 = scalar_lea.hbm %s903_s1, 2048 }
  0x12   : > { %p738_p11 = pnand %p482_p9, %p905_p1  ;;  %p536_p12 = scmp.ne.s32.totalorder %s903_s1, %s535_s26 }
  0x13   : > { %p542_p5 = scmp.lt.u32.totalorder %s535_s26, %s903_s1 }
  0x14   : > { %p537_p13 = pneg %p738_p11 }
  0x16   : > { %p538_p0 = pnand %p537_p13, %p536_p12 }
  0x18   : > { %p539_p3 = pneg %p538_p0 }
  0x1a   : > { %p544_p7 = pnand %p542_p5, %p539_p3 }
  0x1c   : > { %547 = shalt.err (!%p544_p7)
}
  0x1d   : > { %s548_s3 = scalar_lea.vmem %s731_s19, 2048  ;;  %p556_p2 = scmp.lt.s32.totalorder %s731_s19, %s731_s19 }
  0x1e   : > { %p549_p9 = scmp.ne.s32.totalorder %s731_s19, %s548_s3  ;;  %p557_p6 = scmp.lt.s32.totalorder %s548_s3, %s548_s3 }
  0x20   : > { %p551_p10 = pnand %p549_p9, %p537_p13  ;;  %p558_p4 = por %p557_p6, %p556_p2 }
  0x22   : > { %p552_p1 = pneg %p551_p10 }
  0x24   : > { %p559_p8 = pnand %p558_p4, %p552_p1 }
  0x26   : > { %562 = shalt.err (!%p559_p8)
}
  0x27   : > { %s666_s4 = smov 128   ;;  %s667_s5 = smov 8  }
  0x28   : > { %485 = dma.hbm_to_vmem [thread:$0]  (!%p738_p11), %s903_s1, 2048, %s731_s19, [#allocation6], %s666_s4, %s666_s4, %s667_s5  }
  0x29   : > { %p24_p1 = scmp.eq.s32.totalorder %s23_s23, 0  ;;  %p33_p2 = scmp.ne.s32.totalorder %s659_s11, %s655_s10 }
  0x2a   : > { %p34_p4 = scmp.eq.s32.totalorder %s663_s12, 0  ;;  %p495_p6 = scmp.lt.s32.totalorder %s663_s12, 2 }
  0x2b   : > { %s777_s8 = scalar_select %p24_p1, %s659_s11, %s26_s22  }
  0x2c   : > { %p35_p8 = por %p34_p4, %p33_p2  ;;  %p912_p10 = scmp.eq.s32.totalorder %s708_s13, 1 }
  0x2d   : > { %s123_s18 = sand.u32 1, %s659_s11   ;;  %s387_s20 = sshll.u32 %s663_s12, 8 }
  0x2e   : > { %p781_p12 = por %p912_p10, %p33_p2  ;;  %s375_s24 = sshll.u32 %s123_s18, 4 }
  0x2f   : > { %s790_s27 = scalar_lea.hbm %s902_s0, %s387_s20  ;;  %s127_s19 = scalar_lea.vmem [#allocation2], %s375_s24 }
  0x30   : > { %s134_s22 = sshll.u32 %s127_s19, 4  ;;  %p792_p11 = pnand %p495_p6, %p35_p8  ;;  %s796_s22 = int_to_ptr.vmem [resolvable:$true] %s134_s22 }
  0x31   : > { %s798_s28 = scalar_lea.sflag [#allocation3], %s123_s18  ;;  %s563_s29 = scalar_lea.hbm %s790_s27, 256 }
  0x32   : > { %p564_p13 = scmp.ne.s32.totalorder %s790_s27, %s563_s29  ;;  %p565_p0 = pneg %p792_p11 }
  0x33   : > { %s568_s6 = scalar_lea.hbm %s902_s0, 512  ;;  %p569_p7 = scmp.lt.u32.totalorder %s790_s27, %s902_s0 }
  0x34   : > { %p566_p3 = pnand %p565_p0, %p564_p13  ;;  %p570_p9 = scmp.lt.u32.totalorder %s568_s6, %s563_s29 }
  0x35   : > { %p572_p2 = scmp.lt.u32.totalorder %s563_s29, %s790_s27 }
  0x36   : > { %p567_p5 = pneg %p566_p3  ;;  %p571_p1 = por %p570_p9, %p569_p7 }
  0x38   : > { %p573_p4 = por %p572_p2, %p571_p1 }
  0x3a   : > { %p574_p6 = pnand %p573_p4, %p567_p5 }
  0x3c   : > { %577 = shalt.err (!%p574_p6)
}
  0x3d   : > { %s578_s18 = scalar_lea.vmem %s796_s22, 256  ;;  %s668_s24 = smov [#allocation2]  }
  0x3e   : > { %p579_p8 = scmp.ne.s32.totalorder %s796_s22, %s578_s18  ;;  %s583_s25 = sshll.u32 %s668_s24, 4  ;;  %s584_s25 = int_to_ptr.vmem [resolvable:$false] %s583_s25 }
  0x3f   : > { %s585_s26 = scalar_lea.vmem %s584_s25, 512  ;;  %p586_p3 = scmp.lt.s32.totalorder %s796_s22, %s584_s25 }
  0x40   : > { %p581_p10 = pnand %p579_p8, %p565_p0  ;;  %p587_p7 = scmp.lt.s32.totalorder %s585_s26, %s578_s18 }
  0x42   : > { %p582_p13 = pneg %p581_p10  ;;  %p588_p9 = por %p587_p7, %p586_p3 }
  0x44   : > { %p589_p1 = pnand %p588_p9, %p582_p13 }
  0x46   : > { %592 = shalt.err (!%p589_p1)
}
  0x47   : > { %489 = dma.hbm_to_vmem [thread:$0]  (!%p792_p11), %s790_s27, 256, %s796_s22, %s798_s28, %s666_s4, %s666_s4, %s667_s5  }
  0x48   : > { %p915_p0 = scmp.ne.s32.totalorder %s910_s17, 0 }
  0x49   : > { %s832_s19 = sand.u32 (!%p915_p0), 1, %s655_s10   ;;  %p916_p5 = scmp.ne.s32.totalorder (!%p915_p0), %s908_s15, 0 }
  0x4a   : > { %146 = sbr.rel (%p915_p0) target bundleno = 348 (0x15c), region = 28  ;;  %s379_s29 = sshll.u32 (!%p915_p0), %s832_s19, 4 }
  0x4b   : > { %s149_s30 = scalar_lea.sflag (!%p915_p0), [#allocation3], %s832_s19  ;;  %s838_s23 = scalar_lea.vmem (!%p915_p0), [#allocation2], %s379_s29 }
  0x51   : > { %638 = dma.done.wait (%p916_p5), %s149_s30, 256  }
  0x52   : > { %640 = vsyncadd (%p916_p5), %s149_s30, 4294967040  ;;  %p917_p11 = scmp.eq.s32.totalorder %s708_s13, 0 }
  0x54   : > { %642 = dma.done.wait (%p917_p11), [#allocation6], 2048   ;;  %p918_p2 = pmov %p917_p11 }
  0x55   : > { %v181_v0 = vld [vmem:[#allocation5] sm:$0xff]  ;;  %v182_v1 = vld [vmem:[#allocation5 + $0x8] sm:$0xff]  ;;  %v183_v2 = vld [vmem:[#allocation5 + $0x10] sm:$0xff]  ;;  %s176_s15 = scalar_lea.vmem [#allocation7], %s379_s29  ;;  %s388_s4 = sshll.u32 %s708_s13, 8 }
  0x56   : > { %644 = vsyncadd (%p918_p2), [#allocation6], 4294965248  ;;  %v442_v3 = vpack.c.bf16 %v182_v1, %v181_v0  ;;  %v184_v4 = vld [vmem:[#allocation5 + $0x18] sm:$0xff]  ;;  %v185_v6 = vld [vmem:[#allocation5 + $0x20] sm:$0xff]  ;;  %s288_s17 = sshll.u32 %s176_s15, 4  ;;  %s858_s22 = scalar_lea.hbm %s904_s2, %s388_s4  ;;  %s853_s17 = int_to_ptr.vmem [resolvable:$true] %s288_s17 }
  0x57   : > { %v446_v5 = vpack.c.bf16 %v184_v4, %v183_v2  ;;  %v186_v7 = vld [vmem:[#allocation5 + $0x28] sm:$0xff]  ;;  %v179_v9 = vld [vmem:[%s838_s23] sm:$0xff]  ;;  %v188_v11 = vld [vmem:[#allocation5 + $0x38] sm:$0xff]  ;;  %s275_s28 = scalar_lea.sflag [#allocation4], %s832_s19  ;;  %s593_s3 = scalar_lea.vmem %s853_s17, 256 }
  0x58   : > { %443 = vmatprep.subr.bf16.mxu0 %v442_v3  ;;  %v450_v8 = vpack.c.bf16 %v186_v7, %v185_v6  ;;  %v187_v10 = vld [vmem:[#allocation5 + $0x30] sm:$0xff]  ;;  %439 = vmatprep.mubr.f32.mxu0 %v179_v9  ;;  %v189_v13 = vld [vmem:[#allocation5 + $0x40] sm:$0xff]  ;;  %v190_v14 = vld [vmem:[#allocation5 + $0x48] sm:$0xff]  ;;  %p594_p4 = scmp.ne.s32.totalorder %s853_s17, %s593_s3  ;;  %s669_s13 = smov [#allocation7]  }
  0x59   : > { %445 = vmatpush3.bf16.msra.mxu0 %v442_v3  ;;  %v454_v12 = vpack.c.bf16 %v188_v11, %v187_v10  ;;  %v458_v15 = vpack.c.bf16 %v190_v14, %v189_v13  ;;  %v191_v16 = vld [vmem:[#allocation5 + $0x50] sm:$0xff]  ;;  %v192_v17 = vld [vmem:[#allocation5 + $0x58] sm:$0xff]  ;;  %v193_v19 = vld [vmem:[#allocation5 + $0x60] sm:$0xff]  ;;  %s597_s6 = sshll.u32 %s669_s13, 4  ;;  %s598_s6 = int_to_ptr.vmem [resolvable:$false] %s597_s6 }
  0x5a   : > { %447 = vmatprep.subr.bf16.mxu0 %v446_v5  ;;  %v462_v18 = vpack.c.bf16 %v192_v17, %v191_v16  ;;  %v194_v20 = vld [vmem:[#allocation5 + $0x68] sm:$0xff]  ;;  %v195_v22 = vld [vmem:[#allocation5 + $0x70] sm:$0xff]  ;;  %v196_v23 = vld [vmem:[#allocation5 + $0x78] sm:$0xff]  ;;  %p595_p6 = pnand %p594_p4, %p781_p12  ;;  %s599_s7 = scalar_lea.vmem %s598_s6, 512 }
  0x5b   : > { %v466_v21 = vpack.c.bf16 %v194_v20, %v193_v19  ;;  %v470_v24 = vpack.c.bf16 %v196_v23, %v195_v22  ;;  %v180_v25 = vld [vmem:[%s838_s23 + $0x8] sm:$0xff]  ;;  %p600_p10 = scmp.lt.s32.totalorder %s853_s17, %s598_s6  ;;  %p601_p13 = scmp.lt.s32.totalorder %s599_s7, %s593_s3 }
  0x5c   : > { %p596_p8 = pneg %p595_p6 }
  0x5d   : > { %449 = vmatpush3.bf16.msra.mxu0 %v446_v5  ;;  %p602_p3 = por %p601_p13, %p600_p10 }
  0x5e   : > { %451 = vmatprep.subr.bf16.mxu0 %v450_v8 }
  0x5f   : > { %p603_p7 = pnand %p602_p3, %p596_p8 }
  0x61   : > { %453 = vmatpush3.bf16.msra.mxu0 %v450_v8 }
  0x62   : > { %455 = vmatprep.subr.bf16.mxu0 %v454_v12 }
  0x65   : > { %457 = vmatpush3.bf16.msra.mxu0 %v454_v12 }
  0x66   : > { %459 = vmatprep.subr.bf16.mxu0 %v458_v15 }
  0x69   : > { %461 = vmatpush3.bf16.msra.mxu0 %v458_v15 }
  0x6a   : > { %463 = vmatprep.subr.bf16.mxu0 %v462_v18 }
  0x6d   : > { %465 = vmatpush3.bf16.msra.mxu0 %v462_v18 }
  0x6e   : > { %467 = vmatprep.subr.bf16.mxu0 %v466_v21 }
  0x71   : > { %469 = vmatpush3.bf16.msra.mxu0 %v466_v21 }
  0x72   : > { %471 = vmatprep.subr.bf16.mxu0 %v470_v24 }
  0x75   : > { %473 = vmatpush3.bf16.msra.mxu0 %v470_v24 }
  0x78   : > { %440 = vmatmul.mubr.f32.vlgmr.msra.gmra.mrb[0].mxu0 %v180_v25 }
 0x14b   : > { %v441_v26 = vpop.f32.mrb[0].mxu0 }
 0x14c   : > { %273 = vst [vmem:[%s176_s15 + $0x8] sm:$0xff] %v441_v26  ;;  %v263_v27 = vpop.f32.mrb[1].mxu0 }
 0x14d   : > { %272 = vst [vmem:[%s176_s15] sm:$0xff] %v263_v27 }
 0x14e   : > { %606 = shalt.err (!%p603_p7)
}
 0x14f   : > { %s607_s20 = scalar_lea.hbm %s858_s22, 256  ;;  %s611_s25 = scalar_lea.hbm %s904_s2, 512 }
 0x150   : > { %p608_p9 = scmp.ne.s32.totalorder %s858_s22, %s607_s20  ;;  %p612_p5 = scmp.lt.u32.totalorder %s858_s22, %s904_s2 }
 0x151   : > { %p613_p11 = scmp.lt.u32.totalorder %s611_s25, %s607_s20  ;;  %p615_p4 = scmp.lt.u32.totalorder %s607_s20, %s858_s22 }
 0x152   : > { %p609_p1 = pnand %p608_p9, %p781_p12 }
 0x153   : > { %p614_p2 = por %p613_p11, %p612_p5 }
 0x154   : > { %p610_p0 = pneg %p609_p1 }
 0x155   : > { %p616_p6 = por %p615_p4, %p614_p2 }
 0x157   : > { %p617_p8 = pnand %p616_p6, %p610_p0 }
 0x159   : > { %620 = shalt.err (!%p617_p8)
}
 0x15a   : > { %s670_s30 = smov 128   ;;  %s671_s23 = smov 8  }
 0x15b   : > { %480 = dma.vmem_to_hbm [thread:$0]  (%p781_p12), %s853_s17, 256, %s858_s22, %s275_s28, %s670_s30, %s670_s30, %s671_s23  }
 0x15c PF: > { %s303_s15 = sand.u32 1, %s651_s9   ;;  %p919_p10 = scmp.ne.s32.totalorder %s909_s16, 0 }
 0x15d   : > { %p920_p13 = scmp.ge.s32.totalorder %s663_s12, 2  ;;  %s304_s4 = scalar_lea.sflag [#allocation4], %s303_s15 }
 0x15f   : > { %p491_p3 = pnand %p920_p13, %p919_p10 }
 0x161   : > { %646 = dma.done.wait (!%p491_p3), %s304_s4, 256  }
 0x162   : > { %648 = vsyncadd (!%p491_p3), %s304_s4, 4294967040  ;;  %p16_p7 = scmp.ge.s32.totalorder %s743_s21, 4   ;;  %s921_s9 = smov %s655_s10 }
 0x163   : > { %s922_s10 = smov %s659_s11  ;;  %s923_s11 = smov %s777_s8 }
 0x164   : > { %s924_s12 = smov %s743_s21  ;;  %18 = sbr.rel (!%p16_p7) target bundleno = 6 (0x6), region = 77 }
 0x16b   :  { %309 = vsyncpa [#allocation3], 1 }
 0x16c   :  { %311 = vsyncpa [#allocation3 + $0x1], 1 }
 0x16d   :  { %312 = vsyncpa [#allocation6], 1 }
 0x16e   :  { %313 = vsyncpa [#allocation4], 1 }
 0x16f   :  { %315 = vsyncpa [#allocation4 + $0x1], 1 }

</bundles_post_ra>
